<compile_context>
chip_gen: v5e
topology: v5e:2x2
jax: 0.10.0
libtpu: 0.0.40
codegen_flags: <defaults>
</compile_context>

<pallas_src>
import jax
import jax.numpy as jnp
from jax import lax
from jax.experimental import pallas as pl
from jax.experimental.pallas import tpu as pltpu


def _make_ce_partial_kernel(n_rows: int):
    """Per-tile cross-entropy partial sums: sum over valid rows of (lse - label_logit)."""

    def ce_partial_kernel(labels_ref, logits_ref, out_ref):
        pid = pl.program_id(0)

        logits = logits_ref[...].astype(jnp.float32)      # [TM, C] (f32 math in-kernel)
        labels = labels_ref[...]                          # [TM, 1] int32
        tm, c = logits.shape

        # Numerically-stable log-sum-exp per row (exp lands on EUP, reduce on XLU).
        row_max = jnp.max(logits, axis=-1, keepdims=True)                  # [TM, 1]
        lse = row_max + jnp.log(
            jnp.sum(jnp.exp(logits - row_max), axis=-1, keepdims=True)
        )                                                                  # [TM, 1]

        # Fused label gather: one compare+select+sum pass (no onehot matmul).
        col_ids = lax.broadcasted_iota(jnp.int32, (tm, c), 1)              # [TM, C]
        label_logit = jnp.sum(
            jnp.where(col_ids == labels, logits, 0.0), axis=-1, keepdims=True
        )                                                                  # [TM, 1]

        # Mask rows past the real end of the array (tail tile padding).
        row_ids = pid * tm + lax.broadcasted_iota(jnp.int32, (tm, 1), 0)   # [TM, 1]
        per_row = jnp.where(row_ids < n_rows, lse - label_logit, 0.0)      # [TM, 1]

        partial = jnp.sum(per_row)                                         # scalar
        # Lane-dense output tile (unmasked vst); wrapper reads [i, 0, 0].
        out_ref[...] = jnp.broadcast_to(partial, (1, 8, 128)).astype(jnp.float32)

    return ce_partial_kernel


def custom_loss(outputs, labels):
    """outputs: [B, 4, C] float (any dtype); labels: dict of 4 int arrays of shape [B]."""
    B, F, C = outputs.shape
    assert F == 4, "CustomLoss expects 4 fields along axis 1"
    N = B * F

    # Batch-major flatten: row b*4 + f == outputs[b, f].  No transpose, no dtype cast.
    logits = outputs.reshape(N, C)
    label_mat = (
        jnp.stack(
            [labels["name"], labels["id"], labels["date"], labels["title"]], axis=1
        )
        .astype(jnp.int32)
        .reshape(N, 1)
    )

    # Row-tile size: multiple of 8, sized so 2 double-buffered (TM, C) logit
    # tiles stay under ~16 MiB (safe on v5e/v6e/v7x once vmem_limit is raised),
    # capped at 1024 rows (already on the measured HBM-roofline plateau).
    itemsize = jnp.dtype(outputs.dtype).itemsize
    row_bytes = C * itemsize
    vmem_budget = 16 * 1024 * 1024
    tm = min(1024, max(8, vmem_budget // (2 * row_bytes)), ((N + 7) // 8) * 8)
    tm = max(8, (tm // 8) * 8)
    grid = pl.cdiv(N, tm)

    cost = pl.CostEstimate(
        flops=5 * N * C,                  # max, sub, exp-add, select, sums (rough)
        transcendentals=N * C,            # exp
        bytes_accessed=N * C * itemsize + N * 4 + grid * 8 * 128 * 4,
    )

    partials = pl.pallas_call(
        _make_ce_partial_kernel(N),
        out_shape=jax.ShapeDtypeStruct((grid, 8, 128), jnp.float32),
        grid_spec=pltpu.PrefetchScalarGridSpec(
            num_scalar_prefetch=0,
            grid=(grid,),
            in_specs=[
                pl.BlockSpec((tm, 1), lambda i: (i, 0)),   # labels (int32)
                pl.BlockSpec((tm, C), lambda i: (i, 0)),   # logits (native dtype)
            ],
            out_specs=pl.BlockSpec((1, 8, 128), lambda i: (i, 0, 0)),
        ),
        compiler_params=pltpu.CompilerParams(
            dimension_semantics=("parallel",),   # independent tiles -> v7x 2-TC sharding
            vmem_limit_bytes=64 * 1024 * 1024,   # allow the larger double-buffered tiles
        ),
        cost_estimate=cost,
    )(label_mat, logits)

    # sum_f mean_b CE == (1/B) * sum over all 4*B rows.
    return jnp.sum(partials[:, 0, 0]) / jnp.float32(B)


def _reference_loss(outputs, labels):
    """Pure-JAX reference for validation."""

    def ce(logits, y):
        logits = logits.astype(jnp.float32)
        lse = jax.nn.logsumexp(logits, axis=-1)
        picked = jnp.take_along_axis(logits, y[:, None], axis=-1)[:, 0]
        return jnp.mean(lse - picked)

    return (
        ce(outputs[:, 0], labels["name"])
        + ce(outputs[:, 1], labels["id"])
        + ce(outputs[:, 2], labels["date"])
        + ce(outputs[:, 3], labels["title"])
    )


if __name__ == "__main__":
    B, F, C = 8, 4, 32  # batch=8, 4 label fields, 32 classes
    key = jax.random.PRNGKey(0)
    k_out, k_n, k_i, k_d, k_t = jax.random.split(key, 5)

    outputs = jax.random.normal(k_out, (B, F, C), dtype=jnp.float32)
    labels = {
        "name": jax.random.randint(k_n, (B,), 0, C),
        "id": jax.random.randint(k_i, (B,), 0, C),
        "date": jax.random.randint(k_d, (B,), 0, C),
        "title": jax.random.randint(k_t, (B,), 0, C),
    }

    loss = custom_loss(outputs, labels)
    jax.block_until_ready(loss)

    ref = _reference_loss(outputs, labels)
    assert jnp.allclose(loss, ref, rtol=1e-5, atol=1e-5), (loss, ref)

    print("KERNEL_OK")
</pallas_src>

<mosaic_0001>
module attributes {stable_mosaic.version = 11 : i64} {
  func.func @ce_partial_kernel(%arg0: i32, %arg1: memref<32x1xi32, #tpu.memory_space<vmem>>, %arg2: memref<32x32xf32, #tpu.memory_space<vmem>>, %arg3: memref<1x8x128xf32, #tpu.memory_space<vmem>>) attributes {dimension_semantics = [#tpu.dimension_semantics<parallel>], iteration_bounds = array<i64: 1>, scalar_prefetch = 0 : i64, scratch_operands = 0 : i64, tpu.core_type = #tpu.core_type<tc>, window_params = [{transform_indices = @transform_0, window_bounds = array<i64: 32, 1>}, {transform_indices = @transform_1, window_bounds = array<i64: 32, 32>}, {transform_indices = @transform_2, window_bounds = array<i64: 1, 8, 128>}]} {
    %c0 = arith.constant 0 : index
    %c0_0 = arith.constant 0 : index
    %0 = vector.load %arg2[%c0, %c0_0] : memref<32x32xf32, #tpu.memory_space<vmem>>, vector<32x32xf32>
    %c0_1 = arith.constant 0 : index
    %c0_2 = arith.constant 0 : index
    %1 = vector.load %arg1[%c0_1, %c0_2] : memref<32x1xi32, #tpu.memory_space<vmem>>, vector<32x1xi32>
    %cst = arith.constant dense<0xFF800000> : vector<32xf32>
    %2 = vector.multi_reduction <maximumf>, %0, %cst [1] : vector<32x32xf32> to vector<32xf32>
    %3 = vector.shape_cast %2 : vector<32xf32> to vector<32x1xf32>
    %4 = vector.broadcast %3 : vector<32x1xf32> to vector<32x32xf32>
    %5 = arith.subf %0, %4 : vector<32x32xf32>
    %6 = math.exp %5 : vector<32x32xf32>
    %cst_3 = arith.constant dense<0.000000e+00> : vector<32xf32>
    %7 = vector.multi_reduction <add>, %6, %cst_3 [1] : vector<32x32xf32> to vector<32xf32>
    %8 = vector.shape_cast %7 : vector<32xf32> to vector<32x1xf32>
    %9 = math.log %8 : vector<32x1xf32>
    %10 = arith.addf %3, %9 : vector<32x1xf32>
    %11 = tpu.iota {dimensions = array<i32: 1>} : vector<32x32xi32>
    %12 = vector.broadcast %1 : vector<32x1xi32> to vector<32x32xi32>
    %13 = arith.cmpi eq, %11, %12 : vector<32x32xi32>
    %cst_4 = arith.constant 0.000000e+00 : f32
    %14 = vector.broadcast %cst_4 : f32 to vector<32x32xf32>
    %15 = arith.select %13, %0, %14 : vector<32x32xi1>, vector<32x32xf32>
    %cst_5 = arith.constant dense<0.000000e+00> : vector<32xf32>
    %16 = vector.multi_reduction <add>, %15, %cst_5 [1] : vector<32x32xf32> to vector<32xf32>
    %17 = vector.shape_cast %16 : vector<32xf32> to vector<32x1xf32>
    %c32_i32 = arith.constant 32 : i32
    %18 = arith.muli %arg0, %c32_i32 : i32
    %19 = tpu.iota {dimensions = array<i32: 0>} : vector<32x1xi32>
    %20 = vector.broadcast %18 : i32 to vector<32x1xi32>
    %21 = arith.addi %20, %19 : vector<32x1xi32>
    %c32_i32_6 = arith.constant 32 : i32
    %22 = vector.broadcast %c32_i32_6 : i32 to vector<32x1xi32>
    %23 = arith.cmpi slt, %21, %22 : vector<32x1xi32>
    %24 = arith.subf %10, %17 : vector<32x1xf32>
    %cst_7 = arith.constant 0.000000e+00 : f32
    %25 = vector.broadcast %cst_7 : f32 to vector<32x1xf32>
    %26 = arith.select %23, %24, %25 : vector<32x1xi1>, vector<32x1xf32>
    %27 = vector.shape_cast %26 : vector<32x1xf32> to vector<1x32x1xf32>
    %cst_8 = arith.constant dense<0.000000e+00> : vector<1xf32>
    %28 = vector.multi_reduction <add>, %27, %cst_8 [1, 2] : vector<1x32x1xf32> to vector<1xf32>
    %29 = vector.shape_cast %28 : vector<1xf32> to vector<1x1x1xf32>
    %30 = vector.extract %29[0, 0, 0] : f32 from vector<1x1x1xf32>
    %31 = vector.broadcast %30 : f32 to vector<1x8x128xf32>
    %c0_9 = arith.constant 0 : index
    %c0_10 = arith.constant 0 : index
    %c0_11 = arith.constant 0 : index
    %32 = vector.load %arg3[%c0_9, %c0_10, %c0_11] : memref<1x8x128xf32, #tpu.memory_space<vmem>>, vector<1x8x128xf32>
    tpu.vector_store %arg3[%c0_9, %c0_10, %c0_11], %31 {strides = array<i32>} : memref<1x8x128xf32, #tpu.memory_space<vmem>>, vector<1x8x128xf32>,
    return
  }
  func.func @transform_0(%arg0: i32) -> (i32, i32) {
    %c0_i32 = arith.constant 0 : i32
    %c0_i32_0 = arith.constant 0 : i32
    return %arg0, %c0_i32 : i32, i32
  }
  func.func @transform_1(%arg0: i32) -> (i32, i32) {
    %c0_i32 = arith.constant 0 : i32
    %c0_i32_0 = arith.constant 0 : i32
    return %arg0, %c0_i32 : i32, i32
  }
  func.func @transform_2(%arg0: i32) -> (i32, i32, i32) {
    %c0_i32 = arith.constant 0 : i32
    %c0_i32_0 = arith.constant 0 : i32
    %c0_i32_1 = arith.constant 0 : i32
    return %arg0, %c0_i32, %c0_i32_0 : i32, i32, i32
  }
}

</mosaic_0001>

<bundles_post_ra>
// kernel: tpu_custom_call.1
= control target key start
LH: loop header
LB: loop body
LE: loop exit
PB: predicated region body
PF: predicated region fallthrough
CT: control target
= control target key end

     0   :  { %vm20_vm0 = vcmask 261120   ;;  %v210_v4 = vmov 0   ;;  %s279_s0 = inlined_call_operand.vmem [shape: s32[32,1], index: 0, kind: input, shape index: {}]   ;;  %s280_s1 = inlined_call_operand.vmem [shape: f32[32,32], index: 1, kind: input, shape index: {}]   ;;  %s281_s2 = inlined_call_operand.hbm [shape: f32[1,8,128], index: 2, kind: output, shape index: {}]  }
   0x1   :  { %v230_v0 = vld [vmem:[%s280_s1 + $0x10] sm:$0xff]  ;;  %v12_v1 = vld [vmem:[%s280_s1] sm:$0xff]  ;;  %165 = vset.pattern.permute.xlu2 %v210_v4  ;;  %167 = vset.pattern.permute.xlu1 %v210_v4 }
   0x2   :  { %v27_v2 = vsel %vm20_vm0, %v230_v0, -inf  ;;  %v21_v3 = vsel %vm20_vm0, %v12_v1, -inf  ;;  %v16_v5 = vld [vmem:[%s279_s0] sm:$0xff] }
   0x3   :  { %28 = vmax.xlane.f32.xlu1 %v27_v2  ;;  %22 = vmax.xlane.f32.xlu0 %v21_v3 }
   0x4   :  { %7 = vsyncpa [#allocation3], 0  ;;  %72 = vperm.xlu2 %165, %v16_v5   ;;  %166 = vset.pattern.permute.xlu0 %v210_v4  ;;  %v13_v6 = vld [vmem:[%s280_s1 + $0x8] sm:$0xff]  ;;  %v15_v7 = vld [vmem:[%s280_s1 + $0x18] sm:$0xff]  ;;  %v69_v19 = vlaneseq  ;;  %vm126_vm5 = vcmask 7168   ;;  %s152_s27 = sshll.u32 %s281_s2, 4  ;;  %s153_s27 = int_to_ptr.hbm [resolvable:$true] %s152_s27 }
   0x5   :  { %v24_v8 = vsel %vm20_vm0, %v13_v6, -inf  ;;  %v30_v9 = vsel %vm20_vm0, %v15_v7, -inf  ;;  %v17_v10 = vld [vmem:[%s279_s0 + $0x8] sm:$0xff]  ;;  %v18_v11 = vld [vmem:[%s279_s0 + $0x10] sm:$0xff]  ;;  %v19_v12 = vld [vmem:[%s279_s0 + $0x18] sm:$0xff]  ;;  %s211_s0 = smov [#allocation2]  }
   0x6   :  { %v70_v23 = vand.u32 127, %v69_v19  ;;  %s150_s1 = sshll.u32 %s211_s0, 4  ;;  %s151_s1 = int_to_ptr.vmem [resolvable:$true] %s150_s1 }
   0xb   :  { %25 = vmax.xlane.f32.xlu0 %v24_v8  ;;  %31 = vmax.xlane.f32.xlu1 %v30_v9 }
   0xc   :  { %75 = vperm.xlu2 %165, %v17_v10  }
  0x1f   :  { %78 = vperm.xlu0 %166, %v18_v11  }
  0x24   :  { %81 = vperm.xlu1 %167, %v19_v12  }
  0x5e   :  { %v73_v28 = vpop.permute.xlu2 %72 }
  0x5f   :  { %vm83_vm1 = vcmp.eq.s32.totalorder %v70_v23, %v73_v28 }
  0x60   :  { %v87_v32 = vsel %vm83_vm1, %v12_v1, 0.0 }
  0x61   :  { %v91_v34 = vsel %vm20_vm0, %v87_v32, 0.0 }
  0x66   :  { %v76_v38 = vpop.permute.xlu2 %75 }
  0x67   :  { %vm84_vm2 = vcmp.eq.s32.totalorder %v70_v23, %v76_v38 }
  0x68   :  { %v88_v40 = vsel %vm84_vm2, %v13_v6, 0.0 }
  0x69   :  { %v94_v44 = vsel %vm20_vm0, %v88_v40, 0.0 }
  0x76   :  { %v258_v13 = vpop.xlane.xlu1 %28  ;;  %v260_v14 = vpop.xlane.xlu0 %22 }
  0x77   :  { %v35_v15 = vsub.f32 %v230_v0, %v258_v13  ;;  %v33_v16 = vsub.f32 %v12_v1, %v260_v14 }
  0x79   :  { %v41_v17 = vmul.f32 1.442695, %v35_v15  ;;  %v37_v18 = vmul.f32 1.442695, %v33_v16 }
  0x7b   :  { %168 = vpow2.f32 %v41_v17 }
  0x7c   :  { %170 = vpow2.f32 %v37_v18 }
  0x7e   :  { %v26_v20 = vpop.xlane.xlu0 %25  ;;  %v32_v21 = vpop.xlane.xlu1 %31 }
  0x7f   :  { %v34_v22 = vsub.f32 %v13_v6, %v26_v20  ;;  %v36_v24 = vsub.f32 %v15_v7, %v32_v21 }
  0x81   :  { %v169_v25 = vpop.eup %168  ;;  %v39_v26 = vmul.f32 1.442695, %v34_v22  ;;  %v43_v31 = vmul.f32 1.442695, %v36_v24 }
  0x82   :  { %v171_v27 = vpop.eup %170  ;;  %v51_v29 = vsel %vm20_vm0, %v169_v25, 0.0 }
  0x83   :  { %172 = vpow2.f32 %v39_v26  ;;  %52 = vadd.xlane.f32.xlu0 %v51_v29  ;;  %v45_v30 = vsel %vm20_vm0, %v171_v27, 0.0 }
  0x84   :  { %46 = vadd.xlane.f32.xlu2 %v45_v30  ;;  %174 = vpow2.f32 %v43_v31 }
  0x89   :  { %v173_v33 = vpop.eup %172 }
  0x8a   :  { %v48_v35 = vsel %vm20_vm0, %v173_v33, 0.0  ;;  %v175_v36 = vpop.eup %174 }
  0x8b   :  { %49 = vadd.xlane.f32.xlu1 %v48_v35  ;;  %v54_v37 = vsel %vm20_vm0, %v175_v36, 0.0 }
  0x8c   :  { %92 = vadd.xlane.f32.xlu2 %v91_v34 }
  0x91   :  { %v79_v42 = vpop.permute.xlu0 %78 }
  0x92   :  { %vm85_vm4 = vcmp.eq.s32.totalorder %v70_v23, %v79_v42 }
  0x93   :  { %v89_v45 = vsel %vm85_vm4, %v230_v0, 0.0 }
  0x94   :  { %55 = vadd.xlane.f32.xlu2 %v54_v37  ;;  %v97_v46 = vsel %vm20_vm0, %v89_v45, 0.0 }
  0x96   :  { %v82_v39 = vpop.permute.xlu1 %81 }
  0x97   :  { %vm86_vm3 = vcmp.eq.s32.totalorder %v70_v23, %v82_v39 }
  0x98   :  { %v90_v41 = vsel %vm86_vm3, %v15_v7, 0.0 }
  0x99   :  { %v100_v43 = vsel %vm20_vm0, %v90_v41, 0.0 }
  0x9a   :  { %101 = vadd.xlane.f32.xlu1 %v100_v43 }
  0x9c   :  { %95 = vadd.xlane.f32.xlu2 %v94_v44 }
  0xa4   :  { %98 = vadd.xlane.f32.xlu2 %v97_v46 }
  0xf6   :  { %v53_v50 = vpop.xlane.xlu0 %52 }
  0xf7   :  { %v47_v47 = vpop.xlane.xlu2 %46 }
  0xf8   :  { %176 = vlog2.f32 %v47_v47 }
  0xfe   :  { %v50_v49 = vpop.xlane.xlu1 %49  ;;  %v177_v52 = vpop.eup %176 }
  0xff   :  { %v93_v48 = vpop.xlane.xlu2 %92  ;;  %178 = vlog2.f32 %v50_v49  ;;  %v58_v54 = vmul.f32 0.6931472, %v177_v52 }
 0x101   :  { %v65_v59 = vadd.f32 %v58_v54, %v260_v14 }
 0x103   :  { %v118_v0 = vsub.f32 %v65_v59, %v93_v48 }
 0x105   :  { %v179_v53 = vpop.eup %178  ;;  %v127_v6 = vsel %vm126_vm5, %v118_v0, 0.0 }
 0x106   :  { %v60_v55 = vmul.f32 0.6931472, %v179_v53 }
 0x107   :  { %v56_v51 = vpop.xlane.xlu2 %55 }
 0x108   :  { %180 = vlog2.f32 %v56_v51  ;;  %v66_v61 = vadd.f32 %v60_v55, %v26_v20 }
 0x109   :  { %182 = vlog2.f32 %v53_v50 }
 0x10d   :  { %v102_v2 = vpop.xlane.xlu1 %101 }
 0x10e   :  { %v181_v56 = vpop.eup %180 }
 0x10f   :  { %v183_v57 = vpop.eup %182  ;;  %v96_v58 = vpop.xlane.xlu2 %95  ;;  %v64_v60 = vmul.f32 0.6931472, %v181_v56 }
 0x110   :  { %v62_v62 = vmul.f32 0.6931472, %v183_v57  ;;  %v119_v63 = vsub.f32 %v66_v61, %v96_v58 }
 0x111   :  { %v68_v1 = vadd.f32 %v64_v60, %v32_v21 }
 0x112   :  { %v128_v3 = vsel %vm126_vm5, %v119_v63, 0.0  ;;  %v67_v4 = vadd.f32 %v62_v62, %v258_v13 }
 0x113   :  { %v121_v7 = vsub.f32 %v68_v1, %v102_v2  ;;  %v129_v9 = vadd.f32 %v128_v3, %v127_v6 }
 0x115   :  { %v132_v12 = vsel %vm126_vm5, %v121_v7, 0.0 }
 0x117   :  { %v99_v5 = vpop.xlane.xlu2 %98 }
 0x118   :  { %v120_v8 = vsub.f32 %v67_v4, %v99_v5 }
 0x11a   :  { %v130_v10 = vsel %vm126_vm5, %v120_v8, 0.0 }
 0x11b   :  { %v131_v11 = vadd.f32 %v130_v10, %v129_v9 }
 0x11d   :  { %v133_v14 = vadd.f32 %v132_v12, %v131_v11 }
 0x11f   :  { %134 = vadd.xlane.f32.xlu2 %v133_v14 }
 0x192   :  { %v135_v15 = vpop.xlane.xlu2 %134 }
 0x193   :  { %v136_v16 = vrot.slane %v135_v15, 4 }
 0x195   :  { %v137_v17 = vadd.f32 %v136_v16, %v135_v15 }
 0x197   :  { %v138_v18 = vrot.slane %v137_v17, 2 }
 0x199   :  { %v139_v19 = vadd.f32 %v138_v18, %v137_v17 }
 0x19b   :  { %v140_v20 = vrot.slane %v139_v19, 1 }
 0x19d   :  { %v141_v21 = vadd.f32 %v140_v20, %v139_v19 }
 0x19f   :  { %161 = vpush %v141_v21 }
 0x1d0   :  { %s162_s28 = spop %161 }
 0x1d1   :  { %v143_v13 = vstv %s162_s28 }
 0x1d2   :  { %144 = vst [vmem:[#allocation2] sm:$0xff] %v143_v13 }
 0x1d3   :  { %155 = dma.vmem_to_hbm [thread:$0]  %s151_s1, 128, %s153_s27, [#allocation3]  }
 0x1d4   :  { %208 = dma.done.wait [#allocation3], 128  }
 0x1d5   :  { %209 = vsyncadd [#allocation3], 4294967168 }
 0x1d6   :  { %160 = vsyncpa [#allocation3], 1 }

</bundles_post_ra>
